<compile_context>
chip_gen: v7x
topology: tpu7x:2x2x1
jax: 0.10.0
libtpu: 0.0.40
codegen_flags: <defaults>
</compile_context>

<pallas_src>
import jax
import jax.numpy as jnp
from jax.experimental import pallas as pl
from jax.experimental.pallas import tpu as pltpu


_CHUNK_THRESHOLD_BYTES = 4 * 1024 * 1024   # chunk the HBM->HBM DMA above this
_MAX_CHUNKS = 4                            # a few concurrent DMAs is plenty


def _make_hbm_copy_kernel(starts, sizes):
    """Builds an HBM->HBM DMA copy kernel, chunked along axis 0.

    `starts` / `sizes` are static Python ints, so all ref slices are static.
    """
    n_chunks = len(sizes)

    def kernel(x_hbm, o_hbm, sems):
        # Issue every chunk DMA, then wait on all of them.  No VMEM staging,
        # no vld/vst slot usage, no tiling constraints.
        for c in range(n_chunks):
            pltpu.make_async_copy(
                x_hbm.at[pl.ds(starts[c], sizes[c])],
                o_hbm.at[pl.ds(starts[c], sizes[c])],
                sems.at[c],
            ).start()
        for c in range(n_chunks):
            pltpu.make_async_copy(
                x_hbm.at[pl.ds(starts[c], sizes[c])],
                o_hbm.at[pl.ds(starts[c], sizes[c])],
                sems.at[c],
            ).wait()

    return kernel


def _copy_single(x):
    """Materialized identity copy of one array via an HBM->HBM DMA kernel."""
    if x.size == 0:
        # Nothing to DMA; jnp.copy still yields a fresh (empty) buffer.
        return jnp.copy(x)

    orig_shape = x.shape
    xin = x.reshape(1) if x.ndim == 0 else x

    itemsize = jnp.dtype(xin.dtype).itemsize
    nbytes = xin.size * itemsize
    dim0 = xin.shape[0]

    # Chunk only when the array is large and axis 0 can actually be split.
    if nbytes >= _CHUNK_THRESHOLD_BYTES and dim0 >= 2:
        n_chunks = min(_MAX_CHUNKS, dim0)
    else:
        n_chunks = 1

    base, rem = divmod(dim0, n_chunks)
    sizes = tuple(base + (1 if c < rem else 0) for c in range(n_chunks))
    starts = tuple(sum(sizes[:c]) for c in range(n_chunks))

    out = pl.pallas_call(
        _make_hbm_copy_kernel(starts, sizes),
        out_shape=jax.ShapeDtypeStruct(xin.shape, xin.dtype),
        in_specs=[pl.BlockSpec(memory_space=pl.ANY)],
        out_specs=pl.BlockSpec(memory_space=pl.ANY),
        scratch_shapes=[pltpu.SemaphoreType.DMA((n_chunks,))],
        cost_estimate=pl.CostEstimate(
            flops=0, transcendentals=0, bytes_accessed=2 * nbytes),
    )(xin)

    return out.reshape(orig_shape)


def identity_forward(*inputs):
    """Matches PyTorch Identity.forward(*input): return the inputs unchanged.

    Identity has zero required FLOPs and zero required bytes, so the hot path
    emits no kernel and moves no HBM data.
    """
    return inputs


def identity_copy(*inputs):
    """Identity that materializes fresh output buffers via a Pallas DMA copy.

    Only needed when explicit materialization semantics are required;
    otherwise use identity_forward.
    """
    return tuple(_copy_single(x) for x in inputs)


if __name__ == "__main__":
    key = jax.random.PRNGKey(0)
    k1, k2, k3, k4 = jax.random.split(key, 4)

    # Small shapes consistent with a conv-style GAN pass-through.
    x = jax.random.normal(k1, (2, 4, 16, 16), dtype=jnp.float32)   # NCHW feature map
    y = jax.random.normal(k2, (2, 32), dtype=jnp.float32)          # latent / fc vector
    # One larger activation so the chunked DMA path is actually exercised (4 MiB -> 4 chunks).
    z = jax.random.normal(k3, (256, 4096), dtype=jnp.float32)
    # Ragged / awkward shape (105 elems, not a multiple of 128) — previously skipped.
    w = jax.random.normal(k4, (3, 5, 7), dtype=jnp.float32)
    # Scalar input (0-d).
    s = jnp.float32(3.5)

    # 1) Hot path: returns inputs untouched (no kernel, no HBM traffic).
    out = identity_forward(x, y)
    out = jax.tree_util.tree_map(jax.block_until_ready, out)
    assert isinstance(out, tuple) and len(out) == 2
    assert out[0].shape == x.shape and out[0].dtype == x.dtype
    assert out[1].shape == y.shape and out[1].dtype == y.dtype
    assert jnp.array_equal(out[0], x)
    assert jnp.array_equal(out[1], y)

    # 2) Materialized-copy path: every input (tiny, ragged, scalar, large)
    #    runs the HBM->HBM DMA copy kernel and comes back bit-identical.
    inputs = (x, y, z, w, s)
    cpy = identity_copy(*inputs)
    cpy = jax.tree_util.tree_map(jax.block_until_ready, cpy)
    assert isinstance(cpy, tuple) and len(cpy) == len(inputs)
    for a, b in zip(cpy, inputs):
        assert a.shape == jnp.shape(b) and a.dtype == jnp.asarray(b).dtype
        assert jnp.array_equal(a, b)

    print("KERNEL_OK")
</pallas_src>

<mosaic_0001>
module attributes {stable_mosaic.version = 11 : i64} {
  func.func @kernel(%arg0: memref<2x4x16x16xf32, #tpu.memory_space<any>>, %arg1: memref<2x4x16x16xf32, #tpu.memory_space<any>>, %arg2: memref<1x!tpu.dma_semaphore, #tpu.memory_space<semaphore_mem>>) attributes {dimension_semantics = [], scalar_prefetch = 0 : i64, scratch_operands = 1 : i64, tpu.core_type = #tpu.core_type<tc>} {
    %c0_i32 = arith.constant 0 : i32
    %c0_i32_0 = arith.constant 0 : i32
    %c0_i32_1 = arith.constant 0 : i32
    %c0_i32_2 = arith.constant 0 : i32
    %c0_i32_3 = arith.constant 0 : i32
    %0 = tpu.memref_slice %arg0[%c0_i32_0, %c0_i32_1, %c0_i32_2, %c0_i32_3] : memref<2x4x16x16xf32, #tpu.memory_space<any>> -> memref<2x4x16x16xf32, #tpu.memory_space<any>>
    %c0_i32_4 = arith.constant 0 : i32
    %c0_i32_5 = arith.constant 0 : i32
    %c0_i32_6 = arith.constant 0 : i32
    %c0_i32_7 = arith.constant 0 : i32
    %1 = tpu.memref_slice %arg1[%c0_i32_4, %c0_i32_5, %c0_i32_6, %c0_i32_7] : memref<2x4x16x16xf32, #tpu.memory_space<any>> -> memref<2x4x16x16xf32, #tpu.memory_space<any>>
    %2 = tpu.memref_slice %arg2[%c0_i32] : memref<1x!tpu.dma_semaphore, #tpu.memory_space<semaphore_mem>> -> memref<1x!tpu.dma_semaphore, #tpu.memory_space<semaphore_mem>>
    %3 = tpu.memref_squeeze %2 : memref<1x!tpu.dma_semaphore, #tpu.memory_space<semaphore_mem>> -> memref<!tpu.dma_semaphore, #tpu.memory_space<semaphore_mem>>
    tpu.enqueue_dma source(%0 : memref<2x4x16x16xf32, #tpu.memory_space<any>>) target(%1 : memref<2x4x16x16xf32, #tpu.memory_space<any>>) target_semaphore(%3 : memref<!tpu.dma_semaphore, #tpu.memory_space<semaphore_mem>>)
    %c0_i32_8 = arith.constant 0 : i32
    %c0_i32_9 = arith.constant 0 : i32
    %c0_i32_10 = arith.constant 0 : i32
    %c0_i32_11 = arith.constant 0 : i32
    %c0_i32_12 = arith.constant 0 : i32
    %4 = tpu.memref_slice %arg0[%c0_i32_9, %c0_i32_10, %c0_i32_11, %c0_i32_12] : memref<2x4x16x16xf32, #tpu.memory_space<any>> -> memref<2x4x16x16xf32, #tpu.memory_space<any>>
    %c0_i32_13 = arith.constant 0 : i32
    %c0_i32_14 = arith.constant 0 : i32
    %c0_i32_15 = arith.constant 0 : i32
    %c0_i32_16 = arith.constant 0 : i32
    %5 = tpu.memref_slice %arg1[%c0_i32_13, %c0_i32_14, %c0_i32_15, %c0_i32_16] : memref<2x4x16x16xf32, #tpu.memory_space<any>> -> memref<2x4x16x16xf32, #tpu.memory_space<any>>
    %6 = tpu.memref_slice %arg2[%c0_i32_8] : memref<1x!tpu.dma_semaphore, #tpu.memory_space<semaphore_mem>> -> memref<1x!tpu.dma_semaphore, #tpu.memory_space<semaphore_mem>>
    %7 = tpu.memref_squeeze %6 : memref<1x!tpu.dma_semaphore, #tpu.memory_space<semaphore_mem>> -> memref<!tpu.dma_semaphore, #tpu.memory_space<semaphore_mem>>
    tpu.wait_dma2 semaphore(%7 : memref<!tpu.dma_semaphore, #tpu.memory_space<semaphore_mem>>) src(%4 : memref<2x4x16x16xf32, #tpu.memory_space<any>>) dst(%5 : memref<2x4x16x16xf32, #tpu.memory_space<any>>)
    return
  }
}

</mosaic_0001>

<bundles_post_ra>
// kernel: tpu_custom_call.1
= control target key start
LH: loop header
LB: loop body
LE: loop exit
PB: predicated region body
PF: predicated region fallthrough
CT: control target
= control target key end

     0   :  { %s36_s6 = smov [#allocation2]   ;;  %s37_s7 = smov [#allocation3]   ;;  %s55_s0 = inlined_call_operand.hbm [shape: f32[2,4,16,16], index: 0, kind: input, shape index: {}]   ;;  %s56_s1 = inlined_call_operand.hbm [shape: f32[2,4,16,16], index: 1, kind: output, shape index: {}]  }
   0x1   :  { %s38_s8 = smov 0  }
   0x2   :  { %18 = dma.general %s55_s0, 2048, %s56_s1, %s36_s6, %s37_s7, [#allocation4], %s38_s8, 0  }
   0x3   :  { %34 = dma.done.wait [#allocation2], 2048 }
   0x4   :  { %35 = vsyncadd [#allocation2], 4294965248 }
   0x5   :  { %24 = vsyncmov [#allocation2] }
   0x8   :  { %s25_s13 = vpop.sfrf %24 }
   0x9   :  { %p30_p0 = scmp.ne.s32.totalorder %s25_s13, 0 }
   0xb   :  { %29 = shalt.err (%p30_p0)  }

</bundles_post_ra>
